<compile_context>
chip_gen: v6e
topology: v6e:2x2x1
jax: 0.10.0
libtpu: 0.0.40
codegen_flags: <defaults>
</compile_context>

<pallas_src>
import math

import jax
import jax.numpy as jnp
from jax.experimental import pallas as pl
from jax.experimental.pallas import tpu as pltpu

# 0.5*(1 + tanh(z)) == sigmoid(2z)  =>  gelu_tanh(h) = h * sigmoid(C*(h + 0.044715*h^3))
_GELU_C = 2.0 * math.sqrt(2.0 / math.pi)


# ----------------------------- kernels -------------------------------------


def _gelu_tanh(h):
    return h * jax.nn.sigmoid(_GELU_C * (h + 0.044715 * (h * h * h)))


def _partial_proj(x_ref, w1_ref, b1_ref, w2_ref):
    """c_proj contribution of one hidden-dim slice, accumulated in f32."""
    h = jnp.dot(x_ref[...], w1_ref[...], preferred_element_type=jnp.float32)
    h = h + b1_ref[...].astype(jnp.float32)
    h = _gelu_tanh(h)
    h = h.astype(w2_ref.dtype)  # single down-cast right before the second MXU pass
    return jnp.dot(h, w2_ref[...], preferred_element_type=jnp.float32)


def _mlp_kernel_f32_out(x_ref, w1_ref, b1_ref, w2_ref, b2_ref, o_ref):
    """f32 output: the VMEM-resident output block is the accumulator (no scratch)."""
    k = pl.program_id(1)

    @pl.when(k == 0)
    def _():
        o_ref[...] = jnp.broadcast_to(b2_ref[...].astype(jnp.float32), o_ref.shape)

    o_ref[...] += _partial_proj(x_ref, w1_ref, b1_ref, w2_ref)


def _mlp_kernel_acc(x_ref, w1_ref, b1_ref, w2_ref, b2_ref, o_ref, acc_ref):
    """Non-f32 output: f32 VMEM scratch accumulator, single cast at the end."""
    k = pl.program_id(1)

    @pl.when(k == 0)
    def _():
        acc_ref[...] = jnp.broadcast_to(b2_ref[...].astype(jnp.float32), acc_ref.shape)

    acc_ref[...] += _partial_proj(x_ref, w1_ref, b1_ref, w2_ref)

    @pl.when(k == pl.num_programs(1) - 1)
    def _():
        o_ref[...] = acc_ref[...].astype(o_ref.dtype)


# --------------------------- tile selection ---------------------------------


def _round_up(x, m):
    return (x + m - 1) // m * m


def _chip_info():
    """(per-core VMEM bytes, device-kind string) with safe fallbacks."""
    try:
        vmem_cap = int(pltpu.get_tpu_info().vmem_capacity_bytes)
    except Exception:
        vmem_cap = 64 * 1024 * 1024  # conservative (v7x-sized)
    try:
        kind = jax.devices()[0].device_kind.lower()
    except Exception:
        kind = ""
    return vmem_cap, kind


def _vmem_bytes(tile_n, tile_h, D, H, x_itm, w_itm, out_itm, need_scratch):
    b = 2 * tile_n * D * x_itm          # x tile (double-buffered)
    b += 2 * D * tile_h * w_itm         # w1 tile
    b += 2 * tile_h * 4                 # b1 slice (f32)
    b += 2 * tile_h * D * w_itm         # w2 tile
    b += 2 * D * 4                      # b2 (f32)
    b += 2 * tile_n * D * out_itm       # out tile
    if need_scratch:
        b += tile_n * D * 4             # f32 accumulator scratch
    return b


def _select_tiles(N, D, H, x_itm, w_itm, out_itm, need_scratch,
                  tile_n=None, tile_h=None):
    vmem_cap, kind = _chip_info()
    is_v7x = vmem_cap <= 64 * 1024 * 1024 or "7" in kind
    # Soft budget: leave headroom for compiler-internal scratch / semaphores.
    budget = 48 * 1024 * 1024 if vmem_cap <= 64 * 1024 * 1024 else 104 * 1024 * 1024

    # Per-generation row-tile target.  tile_n ~ flops per streamed weight byte;
    # ridge is ~240 flops/byte on v5e, ~650 on v6e, ~620/TC on v7x.
    if tile_n is None:
        if "v5" in kind:
            target_tn = 256
        elif "v6" in kind:
            target_tn = 1024
        else:                       # v7x / unknown: budget-driven on 64 MiB VMEM
            target_tn = 512
    else:
        target_tn = tile_n

    align = 16                      # safe sublane alignment for f32 / bf16 rows
    tn = max(align, min(_round_up(target_tn, align), _round_up(N, align)))

    # v7x: guarantee >=2 row tiles so the "parallel" axis can shard across both
    # TensorCores (helps compute-bound shapes; neutral if weight-DMA-bound).
    if is_v7x and tile_n is None and tn >= 256 and _round_up(N, tn) // tn == 1:
        half = _round_up(tn // 2, 128)
        if _round_up(N, half) // half >= 2:
            tn = half

    # Hidden-dim tile candidates (largest first, exact divisors of H only).
    if tile_h is not None:
        th_cands = [tile_h]
    else:
        th_cands = [H] + [c for c in (2048, 1024, 512, 256, 128)
                          if c < H and H % c == 0]

    # Row-tile fallbacks (shrink tile_h before tile_n).
    tn_cands = [tn]
    t = tn
    while t > 128:
        t = max(128, _round_up(t // 2, 128))
        if t != tn_cands[-1]:
            tn_cands.append(t)

    for cand_tn in tn_cands:
        for cand_th in th_cands:
            if _vmem_bytes(cand_tn, cand_th, D, H, x_itm, w_itm, out_itm,
                           need_scratch) <= budget:
                return cand_tn, cand_th, budget, vmem_cap
    # Nothing fits the soft budget: smallest combo, vmem_limit stretches later.
    return tn_cands[-1], th_cands[-1], budget, vmem_cap


# ------------------------------ wrappers ------------------------------------


def prepare_mlp_params(w1, b1, w2, b2, compute_dtype=None):
    """Pre-transpose torch-layout weights to (in, out) layout and reshape biases.

    Call ONCE at init and cache the result; doing it per forward adds a full
    extra weight read+write in HBM before the kernel even starts.
    """
    w1t = jnp.asarray(w1).T                                    # (D, H)
    w2t = jnp.asarray(w2).T                                    # (H, D)
    if compute_dtype is not None:
        w1t = w1t.astype(compute_dtype)
        w2t = w2t.astype(compute_dtype)
    b1r = jnp.asarray(b1).reshape(1, -1).astype(jnp.float32)   # (1, H)
    b2r = jnp.asarray(b2).reshape(1, -1).astype(jnp.float32)   # (1, D)
    return w1t, b1r, w2t, b2r


def mlp_pallas(x, w1t, b1r, w2t, b2r, *, tile_n=None, tile_h=None,
               compute_dtype=None):
    """Fused c_fc -> GELU(tanh) -> c_proj.  x: (..., D); params from prepare_mlp_params."""
    orig_shape = x.shape
    out_dtype = x.dtype
    D = orig_shape[-1]
    H = w1t.shape[1]
    assert w1t.shape == (D, H) and w2t.shape == (H, D)

    x2d = x.reshape(-1, D)
    if compute_dtype is not None:
        x2d = x2d.astype(compute_dtype)
    N = x2d.shape[0]

    x_itm = jnp.dtype(x2d.dtype).itemsize
    w_itm = jnp.dtype(w1t.dtype).itemsize
    out_itm = jnp.dtype(out_dtype).itemsize
    use_out_as_acc = jnp.dtype(out_dtype) == jnp.float32
    need_scratch = not use_out_as_acc

    tile_n, tile_h, budget, vmem_cap = _select_tiles(
        N, D, H, x_itm, w_itm, out_itm, need_scratch,
        tile_n=tile_n, tile_h=tile_h)
    assert H % tile_h == 0

    n_pad = _round_up(N, tile_n)
    if n_pad != N:
        x2d = jnp.pad(x2d, ((0, n_pad - N), (0, 0)))

    grid = (n_pad // tile_n, H // tile_h)
    n_row_tiles, n_h_tiles = grid

    # Weights are re-streamed once per row tile when the hidden axis is tiled
    # (their block index cycles); only once when it is not.
    weight_passes = n_row_tiles if n_h_tiles > 1 else 1
    weight_bytes = (w1t.size + w2t.size) * w_itm + (b1r.size + b2r.size) * 4
    bytes_accessed = (n_pad * D * x_itm + n_pad * D * out_itm
                      + weight_passes * weight_bytes)
    cost = pl.CostEstimate(flops=int(4 * n_pad * D * H),
                           transcendentals=int(n_pad * H),
                           bytes_accessed=int(bytes_accessed))

    # Always set the scoped-VMEM limit (v5e default is only 16 MiB); keep it
    # comfortably under physical VMEM per generation.
    vmem_est = _vmem_bytes(tile_n, tile_h, D, H, x_itm, w_itm, out_itm, need_scratch)
    vmem_limit = max(int(vmem_est * 3 // 2), 16 * 1024 * 1024)
    vmem_limit = min(vmem_limit, budget)
    vmem_limit = max(vmem_limit, vmem_est + (1 << 20))     # never below the need
    vmem_limit = min(vmem_limit, vmem_cap - (4 << 20))

    compiler_params = pltpu.CompilerParams(
        dimension_semantics=("parallel", "arbitrary"),
        vmem_limit_bytes=int(vmem_limit))

    in_specs = [
        pl.BlockSpec((tile_n, D), lambda i, k: (i, 0)),   # x rows
        pl.BlockSpec((D, tile_h), lambda i, k: (0, k)),   # w1 slice
        pl.BlockSpec((1, tile_h), lambda i, k: (0, k)),   # b1 slice
        pl.BlockSpec((tile_h, D), lambda i, k: (k, 0)),   # w2 slice
        pl.BlockSpec((1, D), lambda i, k: (0, 0)),        # b2 (constant block)
    ]
    out_specs = pl.BlockSpec((tile_n, D), lambda i, k: (i, 0))
    # TODO(synk): pipeline_mode=pl.Buffered(1) on the constant-index b2 spec would
    # save 2*D*4 bytes of VMEM; omitted as negligible vs. lowering-path portability.

    if use_out_as_acc:
        kernel = _mlp_kernel_f32_out
        scratch_shapes = []
    else:
        kernel = _mlp_kernel_acc
        scratch_shapes = [pltpu.VMEM((tile_n, D), jnp.float32)]

    out = pl.pallas_call(
        kernel,
        out_shape=jax.ShapeDtypeStruct((n_pad, D), out_dtype),
        grid_spec=pltpu.PrefetchScalarGridSpec(
            num_scalar_prefetch=0,
            grid=grid,
            in_specs=in_specs,
            out_specs=out_specs,
            scratch_shapes=scratch_shapes,
        ),
        compiler_params=compiler_params,
        cost_estimate=cost,
    )(x2d, w1t, b1r, w2t, b2r)

    if n_pad != N:
        out = out[:N]
    return out.reshape(orig_shape)


def mlp_pallas_torch_layout(x, w1, b1, w2, b2, **kw):
    """Convenience: torch-layout params. Prefer caching prepare_mlp_params() at init."""
    return mlp_pallas(x, *prepare_mlp_params(w1, b1, w2, b2,
                                             compute_dtype=kw.pop("compute_dtype", None)), **kw)


def mlp_reference(x, w1, b1, w2, b2):
    h = x @ w1.T + b1
    h = jax.nn.gelu(h, approximate=True)
    return h @ w2.T + b2


if __name__ == "__main__":
    key = jax.random.PRNGKey(0)
    batch, seq, embed_dim = 2, 8, 32
    hidden = 2 * embed_dim

    kx, k1, k2, k3, k4 = jax.random.split(key, 5)
    x = jax.random.normal(kx, (batch, seq, embed_dim), dtype=jnp.float32)

    # PyTorch nn.Linear default init: U(-1/sqrt(in), 1/sqrt(in))
    bound1 = 1.0 / math.sqrt(embed_dim)
    w1 = jax.random.uniform(k1, (hidden, embed_dim), jnp.float32, -bound1, bound1)
    b1 = jax.random.uniform(k2, (hidden,), jnp.float32, -bound1, bound1)
    bound2 = 1.0 / math.sqrt(hidden)
    w2 = jax.random.uniform(k3, (embed_dim, hidden), jnp.float32, -bound2, bound2)
    b2 = jax.random.uniform(k4, (embed_dim,), jnp.float32, -bound2, bound2)

    params = prepare_mlp_params(w1, b1, w2, b2)   # cache once at init in real use
    out = mlp_pallas(x, *params)
    out = jax.block_until_ready(out)

    ref = mlp_reference(x, w1, b1, w2, b2)
    assert out.shape == (batch, seq, embed_dim)
    # Default-precision TPU matmuls decompose f32 into bf16 passes; allow a
    # slightly looser tolerance than exact-f32 parity.
    assert jnp.allclose(out, ref, atol=1e-4, rtol=1e-4), "mismatch vs reference"

    print("KERNEL_OK")
</pallas_src>

<mosaic_0001>
module attributes {stable_mosaic.version = 11 : i64} {
  func.func @_mlp_kernel_f32_out(%arg0: i32, %arg1: i32, %arg2: memref<16x32xf32, #tpu.memory_space<vmem>>, %arg3: memref<32x64xf32, #tpu.memory_space<vmem>>, %arg4: memref<1x64xf32, #tpu.memory_space<vmem>>, %arg5: memref<64x32xf32, #tpu.memory_space<vmem>>, %arg6: memref<1x32xf32, #tpu.memory_space<vmem>>, %arg7: memref<16x32xf32, #tpu.memory_space<vmem>>) attributes {dimension_semantics = [#tpu.dimension_semantics<parallel>, #tpu.dimension_semantics<arbitrary>], iteration_bounds = array<i64: 1, 1>, scalar_prefetch = 0 : i64, scratch_operands = 0 : i64, tpu.core_type = #tpu.core_type<tc>, window_params = [{transform_indices = @transform_0, window_bounds = array<i64: 16, 32>}, {transform_indices = @transform_1, window_bounds = array<i64: 32, 64>}, {transform_indices = @transform_2, window_bounds = array<i64: 1, 64>}, {transform_indices = @transform_3, window_bounds = array<i64: 64, 32>}, {pipeline_mode = #tpu.pipeline_mode<synchronous>, transform_indices = @transform_4, window_bounds = array<i64: 1, 32>}, {transform_indices = @transform_5, window_bounds = array<i64: 16, 32>}]} {
    %c0_i32 = arith.constant 0 : i32
    %0 = arith.cmpi eq, %arg1, %c0_i32 : i32
    %1 = arith.extui %0 : i1 to i32
    %c0_i32_0 = arith.constant 0 : i32
    %2 = arith.cmpi ne, %1, %c0_i32_0 : i32
    scf.if %2 {
      %c0_16 = arith.constant 0 : index
      %c0_17 = arith.constant 0 : index
      %27 = vector.load %arg6[%c0_16, %c0_17] : memref<1x32xf32, #tpu.memory_space<vmem>>, vector<1x32xf32>
      %28 = vector.shape_cast %27 : vector<1x32xf32> to vector<1x32xf32>
      %29 = vector.broadcast %28 : vector<1x32xf32> to vector<16x32xf32>
      %c0_18 = arith.constant 0 : index
      %c0_19 = arith.constant 0 : index
      %30 = vector.load %arg7[%c0_18, %c0_19] : memref<16x32xf32, #tpu.memory_space<vmem>>, vector<16x32xf32>
      tpu.vector_store %arg7[%c0_18, %c0_19], %29 {strides = array<i32>} : memref<16x32xf32, #tpu.memory_space<vmem>>, vector<16x32xf32>,
    } else {
    }
    %c0 = arith.constant 0 : index
    %c0_1 = arith.constant 0 : index
    %3 = vector.load %arg7[%c0, %c0_1] : memref<16x32xf32, #tpu.memory_space<vmem>>, vector<16x32xf32>
    %c0_2 = arith.constant 0 : index
    %c0_3 = arith.constant 0 : index
    %4 = vector.load %arg2[%c0_2, %c0_3] : memref<16x32xf32, #tpu.memory_space<vmem>>, vector<16x32xf32>
    %c0_4 = arith.constant 0 : index
    %c0_5 = arith.constant 0 : index
    %5 = vector.load %arg3[%c0_4, %c0_5] : memref<32x64xf32, #tpu.memory_space<vmem>>, vector<32x64xf32>
    %cst = arith.constant dense<0.000000e+00> : vector<16x64xf32>
    %6 = tpu.matmul %4, %5, %cst {dimension_numbers = #tpu.dot_dimension_numbers<[1], [0], [0], [1], [0, 0, 1, 1], [], []>} : vector<16x32xf32>, vector<32x64xf32>, vector<16x64xf32> -> vector<16x64xf32>
    %c0_6 = arith.constant 0 : index
    %c0_7 = arith.constant 0 : index
    %7 = vector.load %arg4[%c0_6, %c0_7] : memref<1x64xf32, #tpu.memory_space<vmem>>, vector<1x64xf32>
    %8 = vector.broadcast %7 : vector<1x64xf32> to vector<16x64xf32>
    %9 = arith.addf %6, %8 : vector<16x64xf32>
    %10 = arith.mulf %9, %9 : vector<16x64xf32>
    %11 = arith.mulf %10, %9 : vector<16x64xf32>
    %cst_8 = arith.constant 4.471500e-02 : f32
    %12 = vector.broadcast %cst_8 : f32 to vector<16x64xf32>
    %13 = arith.mulf %12, %11 : vector<16x64xf32>
    %14 = arith.addf %9, %13 : vector<16x64xf32>
    %cst_9 = arith.constant 1.59576917 : f32
    %15 = vector.broadcast %cst_9 : f32 to vector<16x64xf32>
    %16 = arith.mulf %15, %14 : vector<16x64xf32>
    %17 = arith.negf %16 : vector<16x64xf32>
    %18 = math.exp %17 : vector<16x64xf32>
    %cst_10 = arith.constant 1.000000e+00 : f32
    %19 = vector.broadcast %cst_10 : f32 to vector<16x64xf32>
    %20 = arith.addf %19, %18 : vector<16x64xf32>
    %21 = arith.divf %19, %20 : vector<16x64xf32>
    %22 = arith.mulf %9, %21 : vector<16x64xf32>
    %c0_11 = arith.constant 0 : index
    %c0_12 = arith.constant 0 : index
    %23 = vector.load %arg5[%c0_11, %c0_12] : memref<64x32xf32, #tpu.memory_space<vmem>>, vector<64x32xf32>
    %cst_13 = arith.constant dense<0.000000e+00> : vector<16x32xf32>
    %24 = tpu.matmul %22, %23, %cst_13 {dimension_numbers = #tpu.dot_dimension_numbers<[1], [0], [0], [1], [0, 0, 1, 1], [], []>} : vector<16x64xf32>, vector<64x32xf32>, vector<16x32xf32> -> vector<16x32xf32>
    %25 = arith.addf %3, %24 : vector<16x32xf32>
    %c0_14 = arith.constant 0 : index
    %c0_15 = arith.constant 0 : index
    %26 = vector.load %arg7[%c0_14, %c0_15] : memref<16x32xf32, #tpu.memory_space<vmem>>, vector<16x32xf32>
    tpu.vector_store %arg7[%c0_14, %c0_15], %25 {strides = array<i32>} : memref<16x32xf32, #tpu.memory_space<vmem>>, vector<16x32xf32>,
    return
  }
  func.func @transform_0(%arg0: i32, %arg1: i32) -> (i32, i32) {
    %c0_i32 = arith.constant 0 : i32
    %c0_i32_0 = arith.constant 0 : i32
    return %arg0, %c0_i32 : i32, i32
  }
  func.func @transform_1(%arg0: i32, %arg1: i32) -> (i32, i32) {
    %c0_i32 = arith.constant 0 : i32
    %c0_i32_0 = arith.constant 0 : i32
    return %c0_i32, %arg1 : i32, i32
  }
  func.func @transform_2(%arg0: i32, %arg1: i32) -> (i32, i32) {
    %c0_i32 = arith.constant 0 : i32
    %c0_i32_0 = arith.constant 0 : i32
    return %c0_i32, %arg1 : i32, i32
  }
  func.func @transform_3(%arg0: i32, %arg1: i32) -> (i32, i32) {
    %c0_i32 = arith.constant 0 : i32
    %c0_i32_0 = arith.constant 0 : i32
    return %arg1, %c0_i32 : i32, i32
  }
  func.func @transform_4(%arg0: i32, %arg1: i32) -> (i32, i32) {
    %c0_i32 = arith.constant 0 : i32
    %c0_i32_0 = arith.constant 0 : i32
    %c0_i32_1 = arith.constant 0 : i32
    return %c0_i32, %c0_i32_0 : i32, i32
  }
  func.func @transform_5(%arg0: i32, %arg1: i32) -> (i32, i32) {
    %c0_i32 = arith.constant 0 : i32
    %c0_i32_0 = arith.constant 0 : i32
    return %arg0, %c0_i32 : i32, i32
  }
}

</mosaic_0001>

<bundles_post_ra>
// kernel: tpu_custom_call.1
= control target key start
LH: loop header
LB: loop body
LE: loop exit
PB: predicated region body
PF: predicated region fallthrough
CT: control target
= control target key end

     0   :  { %vm32_vm0 = vcmask 261120   ;;  %s443_s0 = inlined_call_operand.vmem [shape: f32[16,32], index: 0, kind: input, shape index: {}]   ;;  %s444_s1 = inlined_call_operand.vmem [shape: f32[32,64], index: 1, kind: input, shape index: {}]   ;;  %s445_s2 = inlined_call_operand.vmem [shape: f32[1,64], index: 2, kind: input, shape index: {}]   ;;  %s446_s3 = inlined_call_operand.vmem [shape: f32[64,32], index: 3, kind: input, shape index: {}]   ;;  %s447_s4 = inlined_call_operand.vmem [shape: f32[1,32], index: 4, kind: input, shape index: {}]   ;;  %s448_s5 = inlined_call_operand.hbm [shape: f32[16,32], index: 5, kind: output, shape index: {}]  }
   0x1   :  { %v42_v0 = vld [vmem:[%s444_s1 + $0x18] sm:$0xff]  ;;  %v41_v1 = vld [vmem:[%s444_s1 + $0x10] sm:$0xff]  ;;  %v37_v2 = vld [vmem:[%s443_s0] sm:$0xff] }
   0x2   :  { %290 = vmatprep.subr.mxu0 %v42_v0  ;;  %v40_v3 = vld [vmem:[%s444_s1 + $0x8] sm:$0xff]  ;;  %298 = vmatprep.mubr.msk.f32.mxu0 %vm32_vm0, %v37_v2 }
   0x3   :  { %291 = vmatpush3.msra.mxu0 %v42_v0 }
   0x4   :  { %10 = vsyncpa [#allocation3], 0  ;;  %292 = vmatprep.subr.mxu0 %v41_v1  ;;  %v39_v4 = vld [vmem:[%s444_s1] sm:$0xff]  ;;  %v38_v5 = vld [vmem:[%s443_s0 + $0x8] sm:$0xff]  ;;  %vm164_vm1 = vcmask 523264  }
   0x5   :  { %293 = vmatpush3.msra.mxu0 %v41_v1  ;;  %v163_v6 = vld [vmem:[%s446_s3 + $0x38] sm:$0xff]  ;;  %v162_v7 = vld [vmem:[%s446_s3 + $0x30] sm:$0xff]  ;;  %v161_v8 = vld [vmem:[%s446_s3 + $0x28] sm:$0xff] }
   0x6   :  { %294 = vmatprep.subr.mxu0 %v40_v3  ;;  %301 = vmatprep.subr.mxu1 %v163_v6  ;;  %v160_v9 = vld [vmem:[%s446_s3 + $0x20] sm:$0xff]  ;;  %v159_v10 = vld [vmem:[%s446_s3 + $0x18] sm:$0xff]  ;;  %v158_v11 = vld [vmem:[%s446_s3 + $0x10] sm:$0xff] }
   0x7   :  { %295 = vmatpush3.msra.mxu0 %v40_v3  ;;  %302 = vmatpush3.msra.mxu1 %v163_v6  ;;  %v157_v12 = vld [vmem:[%s446_s3 + $0x8] sm:$0xff]  ;;  %v156_v13 = vld [vmem:[%s446_s3] sm:$0xff] }
   0x8   :  { %296 = vmatprep.subr.mxu0 %v39_v4  ;;  %303 = vmatprep.subr.mxu1 %v162_v7  ;;  %v266_v14 = vld [vmem:[%s447_s4] ss:$0 sm:$0xff] }
   0x9   :  { %297 = vmatpush3.msra.mxu0 %v39_v4  ;;  %304 = vmatpush3.msra.mxu1 %v162_v7  ;;  %34 = vst.msk [vmem:[#allocation2 + $0x8] sm:$0xff] %vm32_vm0, %v266_v14  ;;  %33 = vst.msk [vmem:[#allocation2] sm:$0xff] %vm32_vm0, %v266_v14  ;;  %v267_v15 = vld [vmem:[%s445_s2] ss:$0 sm:$0xff]  ;;  %s353_s2 = smov [#allocation2]  }
   0xa   :  { %299 = vmatmul.mubr.msk.f32.vlgmr.msra.gmra.mxu0 %vm32_vm0, %v38_v5  ;;  %305 = vmatprep.subr.mxu1 %v161_v8  ;;  %s255_s3 = sshll.u32 %s353_s2, 4  ;;  %s256_s3 = int_to_ptr.vmem [resolvable:$true] %s255_s3 }
   0xb   :  { %306 = vmatpush3.msra.mxu1 %v161_v8  ;;  %s331_s4 = scalar_lea.vmem %s256_s3, 256  ;;  %p336_p1 = scmp.lt.s32.totalorder %s256_s3, %s256_s3 }
   0xc   :  { %307 = vmatprep.subr.mxu1 %v160_v9  ;;  %p332_p0 = scmp.ne.s32.totalorder %s256_s3, %s331_s4  ;;  %p337_p2 = scmp.lt.s32.totalorder %s331_s4, %s331_s4 }
   0xd   :  { %308 = vmatpush3.msra.mxu1 %v160_v9 }
   0xe   :  { %309 = vmatprep.subr.mxu1 %v159_v10  ;;  %p338_p3 = por %p337_p2, %p336_p1 }
   0xf   :  { %310 = vmatpush3.msra.mxu1 %v159_v10 }
  0x10   :  { %311 = vmatprep.subr.mxu1 %v158_v11  ;;  %v36_v40 = vld [vmem:[#allocation2 + $0x8] sm:$0xff]  ;;  %v35_v42 = vld [vmem:[#allocation2] sm:$0xff]  ;;  %p339_p4 = pnand %p338_p3, %p332_p0 }
  0x11   :  { %312 = vmatpush3.msra.mxu1 %v158_v11 }
  0x12   :  { %313 = vmatprep.subr.mxu1 %v157_v12 }
  0x13   :  { %314 = vmatpush3.msra.mxu1 %v157_v12 }
  0x14   :  { %315 = vmatprep.subr.mxu1 %v156_v13 }
  0x15   :  { %316 = vmatpush3.msra.mxu1 %v156_v13 }
  0xca   :  { %v300_v16 = vpop.f32.mrf.mxu0 }
  0xcb   :  { %v129_v17 = vadd.f32 %v300_v16, %v267_v15 }
  0xcc   :  { %v123_v18 = vpop.f32.mrf.mxu0 }
  0xcd   :  { %v133_v19 = vmul.f32 %v129_v17, %v129_v17  ;;  %v124_v20 = vadd.f32 %v267_v15, %v123_v18 }
  0xcf   :  { %v135_v21 = vmul.f32 %v133_v19, %v129_v17  ;;  %v132_v22 = vmul.f32 %v124_v20, %v124_v20 }
  0xd1   :  { %v137_v23 = vmul.f32 0.044715, %v135_v21  ;;  %v134_v24 = vmul.f32 %v132_v22, %v124_v20 }
  0xd3   :  { %v139_v25 = vadd.f32 %v137_v23, %v129_v17  ;;  %v136_v26 = vmul.f32 0.044715, %v134_v24 }
  0xd5   :  { %v271_v27 = vmul.f32 -1.5957692, %v139_v25  ;;  %v138_v28 = vadd.f32 %v136_v26, %v124_v20 }
  0xd7   :  { %v146_v29 = vmul.f32 1.442695, %v271_v27  ;;  %v270_v30 = vmul.f32 -1.5957692, %v138_v28 }
  0xd9   :  { %323 = vpow2.f32 %v146_v29  ;;  %v144_v31 = vmul.f32 1.442695, %v270_v30 }
  0xdb   :  { %325 = vpow2.f32 %v144_v31 }
  0xe6   :  { %v324_v32 = vpop.eup %323 }
  0xe7   :  { %v149_v33 = vadd.f32 1.0, %v324_v32 }
  0xe8   :  { %v326_v34 = vpop.eup %325 }
  0xe9   :  { %v148_v35 = vadd.f32 1.0, %v326_v34  ;;  %327 = vrcp.f32 %v149_v33 }
  0xeb   :  { %329 = vrcp.f32 %v148_v35 }
  0xf6   :  { %v328_v36 = vpop.eup %327 }
  0xf7   :  { %v155_v39 = vmul.f32 %v328_v36, %v129_v17 }
  0xf8   :  { %v330_v37 = vpop.eup %329 }
  0xf9   :  { %v154_v38 = vmul.f32 %v330_v37, %v124_v20 }
  0xfb   :  { %317 = vmatprep.mubr.msk.f32.mxu1 %vm164_vm1, %v154_v38 }
  0xfc   :  { %318 = vmatmul.mubr.msk.f32.vlgmr.msra.gmra.mxu1 %vm164_vm1, %v155_v39 }
 0x1bc   :  { %v319_v41 = vpop.f32.mrf.mxu1 }
 0x1bd   :  { %v247_v43 = vadd.f32 %v319_v41, %v36_v40 }
 0x1be   :  { %v237_v44 = vpop.f32.mrf.mxu1 }
 0x1bf   :  { %249 = vst.msk [vmem:[#allocation2 + $0x8] sm:$0xff] %vm32_vm0, %v247_v43  ;;  %v246_v45 = vadd.f32 %v237_v44, %v35_v42 }
 0x1c1   :  { %248 = vst.msk [vmem:[#allocation2] sm:$0xff] %vm32_vm0, %v246_v45 }
 0x1c2   :  { %342 = shalt.err (!%p339_p4)
}
 0x1c3   :  { %s354_s23 = smov 128   ;;  %s355_s24 = smov 8  }
 0x1c4   :  { %261 = dma.vmem_to_hbm [thread:$0]  %s256_s3, 256, %s448_s5, [#allocation3], %s354_s23, %s354_s23, %s355_s24  }
 0x1c5   :  { %351 = dma.done.wait [#allocation3], 256  }
 0x1c6   :  { %352 = vsyncadd [#allocation3], 4294967040 }
 0x1c7   :  { %265 = vsyncpa [#allocation3], 1 }

</bundles_post_ra>
